<compile_context>
chip_gen: v7x
topology: tpu7x:2x2x1
jax: 0.10.0
libtpu: 0.0.40
codegen_flags: <defaults>
</compile_context>

<pallas_src>
import numpy as np

import jax
import jax.numpy as jnp
from jax.experimental import pallas as pl
from jax.experimental.pallas import tpu as pltpu


# ---------------------------------------------------------------------------
# FEDformer helper (deterministic 'low' mode selection)
# ---------------------------------------------------------------------------
def get_frequency_modes(seq_len, modes, mode_select_method="low"):
    # TODO(synk): 'random' mode selection uses np.random global state in the
    # reference; only the deterministic 'low' variant is implemented.
    modes = min(modes, seq_len // 2)
    index = list(range(0, modes))
    index.sort()
    return index


# ---------------------------------------------------------------------------
# Host-side precompute (numpy float64) -- runs once per weight update,
# NOT inside the per-call compute graph.
# ---------------------------------------------------------------------------
def precompute_decoder_weights(params, seq_len, index):
    """Collapse AutoCorrelationLayer(FourierBlock) into new_x = x @ W_nx + b_nx.

    Built analytically from the small factor matrices (Wq, per-mode complex
    mixes, DFT analysis/synthesis, Wo).  Returns (W_nx bf16, b_nx f32) device
    constants ready for the kernel.
    """
    L = seq_len
    wq = np.asarray(params["wq"], np.float64)          # [D, D] torch layout [out, in]
    bq = np.asarray(params["bq"], np.float64)          # [D]
    wo = np.asarray(params["wo"], np.float64)          # [D, D]
    bo = np.asarray(params["bo"], np.float64)          # [D]
    wr = np.asarray(params["wr"], np.float64)          # [H, E, O, M] real part
    wi = np.asarray(params["wi"], np.float64)          # [H, E, O, M] imag part
    H, E, O, M = wr.shape
    D = wq.shape[0]
    assert H * E == D and H * O == D and len(index) == M

    # rfft analysis at the selected bins / irfft synthesis of output bins 0..M-1
    t = np.arange(L, dtype=np.float64)
    kin = np.asarray(index, np.float64)
    ang_in = 2.0 * np.pi * np.outer(kin, t) / L                    # [M, L]
    fre, fim = np.cos(ang_in), -np.sin(ang_in)
    kout = np.arange(M, dtype=np.float64)
    c2r = np.where((kout == 0) | (kout == L // 2), 1.0, 2.0)       # c2r weighting
    ang_out = 2.0 * np.pi * np.outer(t, kout) / L                  # [L, M]
    cmt = c2r[None, :] * np.cos(ang_out) / L
    smt = -c2r[None, :] * np.sin(ang_out) / L

    # Per-head linear map: out[h,o,l] = sum_{e,k} q[h,e,k] * T[h,e,k,o,l]
    cr = np.einsum("heom,lm->heolm", wr, cmt) + np.einsum("heom,lm->heolm", wi, smt)
    ci = np.einsum("heom,lm->heolm", wr, smt) - np.einsum("heom,lm->heolm", wi, cmt)
    T = (np.einsum("mk,heolm->hekol", fre, cr)
         + np.einsum("mk,heolm->hekol", fim, ci))                  # [H, E, L0, O, L]

    # Map from the Wq-projected input [L0, D'] to the FourierBlock output
    # flattened exactly as `out.view(B, L, -1)` does on the un-permuted
    # [B, H, O, L] tensor (the FEDformer view quirk).  Block-diagonal in head.
    tmid = np.zeros((L, D, H, O, L))
    for h in range(H):
        tmid[:, h * E:(h + 1) * E, h] = np.transpose(T[h], (1, 0, 2, 3))
    tmid = tmid.reshape(L, D, L, D)                                # [l0, d', l, d2]

    wq_t, wo_t = wq.T, wo.T                                        # torch Linear: y = x @ W.T + b
    w_nx = np.einsum("pq,aqbr,rs->apbs", wq_t, tmid, wo_t, optimize=True)
    w_nx = w_nx.reshape(L * D, L * D)                              # linear part
    mid_b = np.einsum("q,aqbr->br", bq, tmid)                      # bq broadcast over time
    b_nx = (mid_b @ wo_t + bo[None, :]).reshape(1, L * D)          # folded bias

    # bf16 weight halves HBM traffic of the DMA-bound kernel; the bias and the
    # residual add stay f32 so bf16 rounding only touches the small new_x term.
    return jnp.asarray(w_nx, jnp.bfloat16), jnp.asarray(b_nx, jnp.float32)


# ---------------------------------------------------------------------------
# Fused kernel:
#   new_x = x @ W_nx + b_nx ; y = x + new_x ;
#   trend = replicate-padded moving average of y (banded, in-kernel) ;
#   res = y - trend
# ---------------------------------------------------------------------------
def _make_decoder_kernel(L, D, kernel_size):
    pad = (kernel_size - 1) // 2
    LD = L * D
    inv_k = float(1.0 / kernel_size)

    def kernel(x_ref, w_ref, b_ref, res_ref, trend_ref, ypad_ref):
        xf = x_ref[...]                                            # [Bp, L*D] f32
        new_x = jnp.dot(xf.astype(jnp.bfloat16), w_ref[...],
                        preferred_element_type=jnp.float32) + b_ref[...]
        y = xf + new_x                                             # residual (dropout = id)

        # series_decomp: stride-1 moving average with replicate-edge padding,
        # done on the lane-dense layout through a small padded VMEM scratch.
        ypad_ref[:, pad * D:(pad + L) * D] = y
        first = y[:, 0:D]                                          # time step 0
        last = y[:, (L - 1) * D:L * D]                             # time step L-1
        for p in range(pad):
            ypad_ref[:, p * D:(p + 1) * D] = first
            ypad_ref[:, (pad + L + p) * D:(pad + L + p + 1) * D] = last

        acc = y                                                    # center tap (j == pad)
        for j in range(kernel_size):
            if j == pad:
                continue
            acc = acc + ypad_ref[:, j * D:j * D + LD]
        trend = acc * inv_k
        res_ref[...] = (y - trend).astype(res_ref.dtype)           # seasonal part
        trend_ref[...] = trend.astype(trend_ref.dtype)             # trend part

    return kernel


# ---------------------------------------------------------------------------
# Wrapper
# ---------------------------------------------------------------------------
def split_one_decoder(x, w_nx, b_nx, *, kernel_size):
    # TODO(synk): list-valued moving_avg (series_decomp_multi) and even kernel
    # sizes are not implemented; FEDformer uses a single odd kernel here.
    assert kernel_size % 2 == 1, "only odd moving_avg kernel sizes supported"
    B, L, D = x.shape
    LD = L * D
    pad = (kernel_size - 1) // 2
    Bp = ((max(B, 8) + 7) // 8) * 8                                # full-vreg sublane dim

    x_flat = x.reshape(B, LD).astype(jnp.float32)                  # lane-dense [B, 512]
    x_pad = jnp.pad(x_flat, ((0, Bp - B), (0, 0)))

    kernel = _make_decoder_kernel(L, D, kernel_size)
    res_p, trend_p = pl.pallas_call(
        kernel,
        out_shape=(jax.ShapeDtypeStruct((Bp, LD), jnp.float32),
                   jax.ShapeDtypeStruct((Bp, LD), jnp.float32)),
        scratch_shapes=[pltpu.VMEM((Bp, (L + 2 * pad) * D), jnp.float32)],
        cost_estimate=pl.CostEstimate(
            flops=2 * Bp * LD * LD + 8 * Bp * LD,
            transcendentals=0,
            bytes_accessed=LD * LD * 2 + LD * 4 + 3 * Bp * LD * 4),
    )(x_pad, w_nx, b_nx)

    return res_p[:B].reshape(B, L, D), trend_p[:B].reshape(B, L, D)


# ---------------------------------------------------------------------------
# Pure-JAX reference (step-by-step, uses jnp.fft -- independent of the
# collapsed matrices and of the host-side DFT construction)
# ---------------------------------------------------------------------------
def reference(x, params, index, kernel_size):
    B, L, D = x.shape
    H, E, O, M = params["wr"].shape
    q = x @ params["wq"].T + params["bq"]
    q = q.reshape(B, L, H, E).transpose(0, 2, 3, 1)                # [B, H, E, L]
    x_ft = jnp.fft.rfft(q, axis=-1)                                # [B, H, E, L//2+1]
    w = params["wr"] + 1j * params["wi"]                           # [H, E, O, M]
    out_ft = jnp.zeros((B, H, O, L // 2 + 1), jnp.complex64)
    for pos, freq in enumerate(index):
        out_ft = out_ft.at[:, :, :, pos].set(
            jnp.einsum("bhi,hio->bho", x_ft[:, :, :, freq], w[:, :, :, pos]))
    out = jnp.fft.irfft(out_ft, n=L, axis=-1)                      # [B, H, O, L]
    mid = out.reshape(B, L, D)                                     # view(B, L, -1) quirk
    y = x + (mid @ params["wo"].T + params["bo"])                  # dropout = identity (eval)
    pad = (kernel_size - 1) // 2
    front = jnp.repeat(y[:, :1], pad, axis=1)
    end = jnp.repeat(y[:, -1:], pad, axis=1)
    ypad = jnp.concatenate([front, y, end], axis=1)
    mean = sum(ypad[:, j:j + L] for j in range(kernel_size)) / kernel_size
    return y - mean, mean


if __name__ == "__main__":
    # configs: d_model=32, n_heads=8 (FourierBlock hard-codes 8 head groups),
    # modes=4, mode_select='low', moving_avg=5, dropout (eval mode).
    # Decoder input length L = seq_len//2 + pred_len; seq_len=16, pred_len=8 -> L=16.
    B, L, D, H = 2, 16, 32, 8
    E = D // H
    MODES = 4
    MOVING_AVG = 5
    index = get_frequency_modes(L, MODES, "low")
    M = len(index)

    key = jax.random.PRNGKey(0)
    kx, ka, kb, kc, kd, ke, kf = jax.random.split(key, 7)
    bound = 1.0 / np.sqrt(D)
    scale = 1.0 / (D * D)
    params = {
        # nn.Linear weights stored torch-style [out, in]
        "wq": jax.random.uniform(ka, (D, D), jnp.float32, -bound, bound),
        "bq": jax.random.uniform(kb, (D,), jnp.float32, -bound, bound),
        "wo": jax.random.uniform(kc, (D, D), jnp.float32, -bound, bound),
        "bo": jax.random.uniform(kd, (D,), jnp.float32, -bound, bound),
        # FourierBlock weights1: complex [8, D//8, D//8, M] -> real/imag parts,
        # each ~ scale * U[0,1) like torch.rand(..., dtype=cfloat)
        "wr": scale * jax.random.uniform(ke, (H, E, E, M), jnp.float32),
        "wi": scale * jax.random.uniform(kf, (H, E, E, M), jnp.float32),
    }
    x = jax.random.normal(kx, (B, L, D), jnp.float32)

    # Host-side collapse of the attention branch (once per weight update).
    w_nx, b_nx = precompute_decoder_weights(params, L, index)

    res, trend = split_one_decoder(x, w_nx, b_nx, kernel_size=MOVING_AVG)
    res = jax.block_until_ready(res)
    trend = jax.block_until_ready(trend)

    ref_res, ref_trend = reference(x, params, index, MOVING_AVG)
    ref_res = jax.block_until_ready(ref_res)
    ref_trend = jax.block_until_ready(ref_trend)

    np.testing.assert_allclose(np.asarray(res), np.asarray(ref_res),
                               rtol=2e-3, atol=2e-3)
    np.testing.assert_allclose(np.asarray(trend), np.asarray(ref_trend),
                               rtol=2e-3, atol=2e-3)
    assert res.shape == (B, L, D) and trend.shape == (B, L, D)

    print("KERNEL_OK")
</pallas_src>

<mosaic_0001>
module attributes {stable_mosaic.version = 11 : i64} {
  func.func @kernel(%arg0: memref<8x512xf32, #tpu.memory_space<vmem>>, %arg1: memref<512x512xbf16, #tpu.memory_space<vmem>>, %arg2: memref<1x512xf32, #tpu.memory_space<vmem>>, %arg3: memref<8x512xf32, #tpu.memory_space<vmem>>, %arg4: memref<8x512xf32, #tpu.memory_space<vmem>>, %arg5: memref<8x640xf32, #tpu.memory_space<vmem>>) attributes {dimension_semantics = [], scalar_prefetch = 0 : i64, scratch_operands = 1 : i64, tpu.core_type = #tpu.core_type<tc>} {
    %c0 = arith.constant 0 : index
    %c0_0 = arith.constant 0 : index
    %0 = vector.load %arg0[%c0, %c0_0] : memref<8x512xf32, #tpu.memory_space<vmem>>, vector<8x512xf32>
    %1 = arith.truncf %0 : vector<8x512xf32> to vector<8x512xbf16>
    %c0_1 = arith.constant 0 : index
    %c0_2 = arith.constant 0 : index
    %2 = vector.load %arg1[%c0_1, %c0_2] : memref<512x512xbf16, #tpu.memory_space<vmem>>, vector<512x512xbf16>
    %cst = arith.constant dense<0.000000e+00> : vector<8x512xf32>
    %3 = tpu.matmul %1, %2, %cst {dimension_numbers = #tpu.dot_dimension_numbers<[1], [0], [0], [1], [0, 0, 1, 1], [], []>} : vector<8x512xbf16>, vector<512x512xbf16>, vector<8x512xf32> -> vector<8x512xf32>
    %c0_3 = arith.constant 0 : index
    %c0_4 = arith.constant 0 : index
    %4 = vector.load %arg2[%c0_3, %c0_4] : memref<1x512xf32, #tpu.memory_space<vmem>>, vector<1x512xf32>
    %5 = vector.broadcast %4 : vector<1x512xf32> to vector<8x512xf32>
    %6 = arith.addf %3, %5 : vector<8x512xf32>
    %7 = arith.addf %0, %6 : vector<8x512xf32>
    %c0_5 = arith.constant 0 : index
    %c64 = arith.constant 64 : index
    %8 = vector.load %arg5[%c0_5, %c64] : memref<8x640xf32, #tpu.memory_space<vmem>>, vector<8x512xf32>
    tpu.vector_store %arg5[%c0_5, %c64], %7 {strides = array<i32>} : memref<8x640xf32, #tpu.memory_space<vmem>>, vector<8x512xf32>,
    %9 = vector.extract_strided_slice %7 {offsets = [0, 0], sizes = [8, 32], strides = [1, 1]} : vector<8x512xf32> to vector<8x32xf32>
    %10 = vector.extract_strided_slice %7 {offsets = [0, 480], sizes = [8, 32], strides = [1, 1]} : vector<8x512xf32> to vector<8x32xf32>
    %c0_6 = arith.constant 0 : index
    %c0_7 = arith.constant 0 : index
    %11 = vector.load %arg5[%c0_6, %c0_7] : memref<8x640xf32, #tpu.memory_space<vmem>>, vector<8x32xf32>
    tpu.vector_store %arg5[%c0_6, %c0_7], %9 {strides = array<i32>} : memref<8x640xf32, #tpu.memory_space<vmem>>, vector<8x32xf32>,
    %c0_8 = arith.constant 0 : index
    %c576 = arith.constant 576 : index
    %12 = vector.load %arg5[%c0_8, %c576] : memref<8x640xf32, #tpu.memory_space<vmem>>, vector<8x32xf32>
    tpu.vector_store %arg5[%c0_8, %c576], %10 {strides = array<i32>} : memref<8x640xf32, #tpu.memory_space<vmem>>, vector<8x32xf32>,
    %c0_9 = arith.constant 0 : index
    %c32 = arith.constant 32 : index
    %13 = vector.load %arg5[%c0_9, %c32] : memref<8x640xf32, #tpu.memory_space<vmem>>, vector<8x32xf32>
    tpu.vector_store %arg5[%c0_9, %c32], %9 {strides = array<i32>} : memref<8x640xf32, #tpu.memory_space<vmem>>, vector<8x32xf32>,
    %c0_10 = arith.constant 0 : index
    %c608 = arith.constant 608 : index
    %14 = vector.load %arg5[%c0_10, %c608] : memref<8x640xf32, #tpu.memory_space<vmem>>, vector<8x32xf32>
    tpu.vector_store %arg5[%c0_10, %c608], %10 {strides = array<i32>} : memref<8x640xf32, #tpu.memory_space<vmem>>, vector<8x32xf32>,
    %c0_11 = arith.constant 0 : index
    %c0_12 = arith.constant 0 : index
    %15 = vector.load %arg5[%c0_11, %c0_12] : memref<8x640xf32, #tpu.memory_space<vmem>>, vector<8x512xf32>
    %16 = arith.addf %7, %15 : vector<8x512xf32>
    %c0_13 = arith.constant 0 : index
    %c32_14 = arith.constant 32 : index
    %17 = vector.load %arg5[%c0_13, %c32_14] : memref<8x640xf32, #tpu.memory_space<vmem>>, vector<8x512xf32>
    %18 = arith.addf %16, %17 : vector<8x512xf32>
    %c0_15 = arith.constant 0 : index
    %c96 = arith.constant 96 : index
    %19 = vector.load %arg5[%c0_15, %c96] : memref<8x640xf32, #tpu.memory_space<vmem>>, vector<8x512xf32>
    %20 = arith.addf %18, %19 : vector<8x512xf32>
    %c0_16 = arith.constant 0 : index
    %c128 = arith.constant 128 : index
    %21 = vector.load %arg5[%c0_16, %c128] : memref<8x640xf32, #tpu.memory_space<vmem>>, vector<8x512xf32>
    %22 = arith.addf %20, %21 : vector<8x512xf32>
    %cst_17 = arith.constant 2.000000e-01 : f32
    %23 = vector.broadcast %cst_17 : f32 to vector<8x512xf32>
    %24 = arith.mulf %22, %23 : vector<8x512xf32>
    %25 = arith.subf %7, %24 : vector<8x512xf32>
    %c0_18 = arith.constant 0 : index
    %c0_19 = arith.constant 0 : index
    %26 = vector.load %arg3[%c0_18, %c0_19] : memref<8x512xf32, #tpu.memory_space<vmem>>, vector<8x512xf32>
    tpu.vector_store %arg3[%c0_18, %c0_19], %25 {strides = array<i32>} : memref<8x512xf32, #tpu.memory_space<vmem>>, vector<8x512xf32>,
    %c0_20 = arith.constant 0 : index
    %c0_21 = arith.constant 0 : index
    %27 = vector.load %arg4[%c0_20, %c0_21] : memref<8x512xf32, #tpu.memory_space<vmem>>, vector<8x512xf32>
    tpu.vector_store %arg4[%c0_20, %c0_21], %24 {strides = array<i32>} : memref<8x512xf32, #tpu.memory_space<vmem>>, vector<8x512xf32>,
    return
  }
}

</mosaic_0001>

<bundles_post_ra>
// kernel: tpu_custom_call.1
= control target key start
LH: loop header
LB: loop body
LE: loop exit
PB: predicated region body
PF: predicated region fallthrough
CT: control target
= control target key end

     0   :  { %10 = vsyncpa [#allocation4], 0  ;;  %s1764_s0 = inlined_call_operand.hbm [shape: f32[8,512], index: 0, kind: input, shape index: {}]   ;;  %s1765_s1 = inlined_call_operand.hbm [shape: bf16[512,512], index: 1, kind: input, shape index: {}]   ;;  %s1766_s2 = inlined_call_operand.vmem [shape: f32[1,512], index: 2, kind: input, shape index: {}]   ;;  %s1767_s3 = inlined_call_operand.hbm [shape: f32[8,512], index: 3, kind: output, shape index: {0}]   ;;  %s1768_s4 = inlined_call_operand.hbm [shape: f32[8,512], index: 4, kind: output, shape index: {1}]  }
   0x1   :  { %11 = vsyncpa [#allocation7], 0 }
   0x2   :  { %12 = vsyncpa [#allocation5], 0 }
   0x3   :  { %13 = vsyncpa [#allocation10], 0  ;;  %s1589_s15 = smov [#allocation3]   ;;  %s1590_s17 = smov [#allocation6]  }
   0x4   :  { %s20_s16 = sshll.u32 %s1589_s15, 4  ;;  %s29_s18 = sshll.u32 %s1590_s17, 4  ;;  %s21_s16 = int_to_ptr.vmem [resolvable:$true] %s20_s16  ;;  %s1623_s18 = int_to_ptr.vmem [resolvable:$true] %s29_s18 }
   0x5   :  { %s1493_s21 = scalar_lea.hbm %s1764_s0, 512 }
   0x6   :  { %p1494_p0 = scmp.ne.s32.totalorder %s1764_s0, %s1493_s21  ;;  %p1497_p1 = scmp.lt.u32.totalorder %s1493_s21, %s1764_s0 }
   0x8   :  { %p1499_p2 = pnand %p1497_p1, %p1494_p0 }
   0xa   :  { %1502 = shalt.err (!%p1499_p2)
}
   0xb   :  { %s1503_s26 = scalar_lea.vmem %s21_s16, 512  ;;  %p1508_p4 = scmp.lt.s32.totalorder %s21_s16, %s21_s16 }
   0xc   :  { %p1504_p3 = scmp.ne.s32.totalorder %s21_s16, %s1503_s26  ;;  %p1509_p5 = scmp.lt.s32.totalorder %s1503_s26, %s1503_s26 }
   0xe   :  { %p1510_p6 = por %p1509_p5, %p1508_p4 }
  0x10   :  { %p1511_p7 = pnand %p1510_p6, %p1504_p3 }
  0x12   :  { %1514 = shalt.err (!%p1511_p7)
}
  0x13   :  { %23 = dma.hbm_to_vmem [thread:$0]  %s1764_s0, 512, %s21_s16, [#allocation4]  }
  0x14   :  { %s1515_s5 = scalar_lea.hbm %s1765_s1, 16384 }
  0x15   :  { %p1516_p8 = scmp.ne.s32.totalorder %s1765_s1, %s1515_s5  ;;  %p1519_p9 = scmp.lt.u32.totalorder %s1515_s5, %s1765_s1 }
  0x17   :  { %p1521_p10 = pnand %p1519_p9, %p1516_p8 }
  0x19   :  { %1524 = shalt.err (!%p1521_p10)
}
  0x1a   :  { %s1525_s10 = scalar_lea.vmem %s1623_s18, 16384  ;;  %p1530_p12 = scmp.lt.s32.totalorder %s1623_s18, %s1623_s18 }
  0x1b   :  { %p1526_p11 = scmp.ne.s32.totalorder %s1623_s18, %s1525_s10  ;;  %p1531_p13 = scmp.lt.s32.totalorder %s1525_s10, %s1525_s10 }
  0x1d   :  { %p1532_p0 = por %p1531_p13, %p1530_p12 }
  0x1f   :  { %p1533_p1 = pnand %p1532_p0, %p1526_p11 }
  0x21   :  { %1536 = shalt.err (!%p1533_p1)
}
  0x22   :  { %s1591_s0 = smov 256   ;;  %s1592_s11 = smov 16  }
  0x23   :  { %35 = dma.hbm_to_vmem [thread:$0]  %s1765_s1, 16384, %s1623_s18, [#allocation7], %s1591_s0, %s1591_s0, %s1592_s11  }
  0x24   :  { %1581 = dma.done.wait [#allocation4], 512  }
  0x25   :  { %1582 = vsyncadd [#allocation4], 4294966784 }
  0x26   :  { %1583 = dma.done.wait [#allocation7], 16384  }
  0x27   :  { %1584 = vsyncadd [#allocation7], 4294950912  ;;  %v1301_v0 = vld [vmem:[#allocation6 + $0x4] ss:$16 sps:$4 sm:$0xff]   ;;  %v1305_v2 = vld [vmem:[#allocation6] ss:$16 sps:$4 sm:$0xff]  }
  0x28   :  { %v1303_v1 = vld [vmem:[#allocation6 + $0x204] ss:$16 sps:$4 sm:$0xff]   ;;  %842 = vmatprep.subr.bf16.mxu0 %v1301_v0  ;;  %v1306_v3 = vld [vmem:[#allocation6 + $0x200] ss:$16 sps:$4 sm:$0xff]   ;;  %v1654_v46 = vld [vmem:[#allocation3 + $0x8] sm:$0xff]  ;;  %s1594_s15 = smov 32  }
  0x29   :  { %883 = vmatprep.subr.bf16.mxu1 %v1303_v1  ;;  %v1307_v4 = vld [vmem:[#allocation6 + $0x24] ss:$16 sps:$4 sm:$0xff]   ;;  %843 = vmatpush1.bf16.msra.mxu0 %v1305_v2  ;;  %v1311_v6 = vld [vmem:[#allocation6 + $0x20] ss:$16 sps:$4 sm:$0xff]   ;;  %v1658_v49 = vpack.c.bf16 %v1654_v46, %v1654_v46  ;;  %v1660_v50 = vld [vmem:[#allocation3 + $0x18] sm:$0xff]  ;;  %s1595_s16 = smov 96  }
  0x2a   :  { %884 = vmatpush1.bf16.msra.mxu1 %v1306_v3  ;;  %v1309_v5 = vld [vmem:[#allocation6 + $0x224] ss:$16 sps:$4 sm:$0xff]   ;;  %844 = vmatprep.subr.bf16.mxu0 %v1307_v4  ;;  %v1312_v7 = vld [vmem:[#allocation6 + $0x220] ss:$16 sps:$4 sm:$0xff]   ;;  %v51_v52 = vpack.c.bf16 %v1660_v50, %v1660_v50  ;;  %vm1031_vm0 = vcmask 1048064   ;;  %vm1037_vm1 = vcmask 261120  }
  0x2b   :  { %885 = vmatprep.subr.bf16.mxu1 %v1309_v5  ;;  %v1313_v8 = vld [vmem:[#allocation6 + $0x44] ss:$16 sps:$4 sm:$0xff]   ;;  %v1317_v10 = vld [vmem:[#allocation6 + $0x40] ss:$16 sps:$4 sm:$0xff]   ;;  %874 = vmatprep.mubr.bf16.mxu0 %v1658_v49  ;;  %vm1022_vm2 = vcmask 523264   ;;  %vm1047_vm3 = vcmask 523520  }
  0x2c   :  { %v1315_v9 = vld [vmem:[#allocation6 + $0x244] ss:$16 sps:$4 sm:$0xff]   ;;  %v1318_v11 = vld [vmem:[#allocation6 + $0x240] ss:$16 sps:$4 sm:$0xff]   ;;  %915 = vmatprep.mubr.bf16.mxu1 %v51_v52  ;;  %vm1042_vm4 = vcmask 785920   ;;  %vm1049_vm5 = vcmask 1048320  }
  0x2d   :  { %845 = vmatpush1.bf16.msra.mxu0 %v1311_v6  ;;  %v1319_v12 = vld [vmem:[#allocation6 + $0x64] ss:$16 sps:$4 sm:$0xff]   ;;  %v1323_v14 = vld [vmem:[#allocation6 + $0x60] ss:$16 sps:$4 sm:$0xff]   ;;  %v1399_v6 = vld [vmem:[#allocation6 + $0xc] ss:$16 sps:$4 sm:$0xff]  }
  0x2e   :  { %886 = vmatpush1.bf16.msra.mxu1 %v1312_v7  ;;  %846 = vmatprep.subr.bf16.mxu0 %v1313_v8  ;;  %v1321_v13 = vld [vmem:[#allocation6 + $0x264] ss:$16 sps:$4 sm:$0xff]   ;;  %v1324_v15 = vld [vmem:[#allocation6 + $0x260] ss:$16 sps:$4 sm:$0xff]   ;;  %v1402_v7 = vld [vmem:[#allocation6 + $0x20c] ss:$16 sps:$4 sm:$0xff]  }
  0x2f   :  { %887 = vmatprep.subr.bf16.mxu1 %v1315_v9  ;;  %v1325_v16 = vld [vmem:[#allocation6 + $0x84] ss:$16 sps:$4 sm:$0xff]   ;;  %v1329_v18 = vld [vmem:[#allocation6 + $0x80] ss:$16 sps:$4 sm:$0xff]   ;;  %vm1079_vm6 = vcmask 785408   ;;  %s1596_s17 = smov [#allocation9]  }
  0x30   :  { %v1327_v17 = vld [vmem:[#allocation6 + $0x284] ss:$16 sps:$4 sm:$0xff]   ;;  %v1330_v19 = vld [vmem:[#allocation6 + $0x280] ss:$16 sps:$4 sm:$0xff]   ;;  %s1150_s18 = sshll.u32 %s1596_s17, 4  ;;  %s1597_s19 = smov [#allocation8]   ;;  %s1151_s18 = int_to_ptr.vmem [resolvable:$true] %s1150_s18 }
  0x31   :  { %847 = vmatpush1.bf16.msra.mxu0 %v1317_v10  ;;  %v1331_v20 = vld [vmem:[#allocation6 + $0xa4] ss:$16 sps:$4 sm:$0xff]   ;;  %v1335_v22 = vld [vmem:[#allocation6 + $0xa0] ss:$16 sps:$4 sm:$0xff]   ;;  %v1397_v10 = vld [vmem:[#allocation6 + $0x8] ss:$16 sps:$4 sm:$0xff]   ;;  %p1542_p3 = scmp.lt.s32.totalorder %s1151_s18, %s1151_s18 }
  0x32   :  { %888 = vmatpush1.bf16.msra.mxu1 %v1318_v11  ;;  %848 = vmatprep.subr.bf16.mxu0 %v1319_v12  ;;  %v1333_v21 = vld [vmem:[#allocation6 + $0x2a4] ss:$16 sps:$4 sm:$0xff]   ;;  %v1336_v23 = vld [vmem:[#allocation6 + $0x2a0] ss:$16 sps:$4 sm:$0xff]   ;;  %v1400_v11 = vld [vmem:[#allocation6 + $0x208] ss:$16 sps:$4 sm:$0xff]  }
  0x33   :  { %889 = vmatprep.subr.bf16.mxu1 %v1321_v13  ;;  %v1337_v24 = vld [vmem:[#allocation6 + $0xc4] ss:$16 sps:$4 sm:$0xff]   ;;  %v1341_v26 = vld [vmem:[#allocation6 + $0xc0] ss:$16 sps:$4 sm:$0xff]   ;;  %v1405_v12 = vld [vmem:[#allocation6 + $0x2c] ss:$16 sps:$4 sm:$0xff]  }
  0x34   :  { %v1339_v25 = vld [vmem:[#allocation6 + $0x2c4] ss:$16 sps:$4 sm:$0xff]   ;;  %v1342_v27 = vld [vmem:[#allocation6 + $0x2c0] ss:$16 sps:$4 sm:$0xff]   ;;  %v1408_v13 = vld [vmem:[#allocation6 + $0x22c] ss:$16 sps:$4 sm:$0xff]  }
  0x35   :  { %849 = vmatpush1.bf16.msra.mxu0 %v1323_v14  ;;  %v1343_v28 = vld [vmem:[#allocation6 + $0xe4] ss:$16 sps:$4 sm:$0xff]   ;;  %v1347_v30 = vld [vmem:[#allocation6 + $0xe0] ss:$16 sps:$4 sm:$0xff]   ;;  %v1403_v14 = vld [vmem:[#allocation6 + $0x28] ss:$16 sps:$4 sm:$0xff]  }
  0x36   :  { %890 = vmatpush1.bf16.msra.mxu1 %v1324_v15  ;;  %850 = vmatprep.subr.bf16.mxu0 %v1325_v16  ;;  %v1345_v29 = vld [vmem:[#allocation6 + $0x2e4] ss:$16 sps:$4 sm:$0xff]   ;;  %v1348_v31 = vld [vmem:[#allocation6 + $0x2e0] ss:$16 sps:$4 sm:$0xff]   ;;  %v1406_v15 = vld [vmem:[#allocation6 + $0x228] ss:$16 sps:$4 sm:$0xff]  }
  0x37   :  { %891 = vmatprep.subr.bf16.mxu1 %v1327_v17  ;;  %v1349_v32 = vld [vmem:[#allocation6 + $0x104] ss:$16 sps:$4 sm:$0xff]   ;;  %v1353_v34 = vld [vmem:[#allocation6 + $0x100] ss:$16 sps:$4 sm:$0xff]   ;;  %v1411_v16 = vld [vmem:[#allocation6 + $0x4c] ss:$16 sps:$4 sm:$0xff]  }
  0x38   :  { %v1351_v33 = vld [vmem:[#allocation6 + $0x304] ss:$16 sps:$4 sm:$0xff]   ;;  %v1354_v35 = vld [vmem:[#allocation6 + $0x300] ss:$16 sps:$4 sm:$0xff]   ;;  %v1414_v17 = vld [vmem:[#allocation6 + $0x24c] ss:$16 sps:$4 sm:$0xff]  }
  0x39   :  { %851 = vmatpush1.bf16.msra.mxu0 %v1329_v18  ;;  %v1355_v36 = vld [vmem:[#allocation6 + $0x124] ss:$16 sps:$4 sm:$0xff]   ;;  %v1359_v38 = vld [vmem:[#allocation6 + $0x120] ss:$16 sps:$4 sm:$0xff]   ;;  %v1409_v18 = vld [vmem:[#allocation6 + $0x48] ss:$16 sps:$4 sm:$0xff]  }
  0x3a   :  { %892 = vmatpush1.bf16.msra.mxu1 %v1330_v19  ;;  %852 = vmatprep.subr.bf16.mxu0 %v1331_v20  ;;  %v1357_v37 = vld [vmem:[#allocation6 + $0x324] ss:$16 sps:$4 sm:$0xff]   ;;  %v1360_v39 = vld [vmem:[#allocation6 + $0x320] ss:$16 sps:$4 sm:$0xff]   ;;  %v1412_v19 = vld [vmem:[#allocation6 + $0x248] ss:$16 sps:$4 sm:$0xff]  }
  0x3b   :  { %893 = vmatprep.subr.bf16.mxu1 %v1333_v21  ;;  %v1361_v40 = vld [vmem:[#allocation6 + $0x144] ss:$16 sps:$4 sm:$0xff]   ;;  %v1365_v42 = vld [vmem:[#allocation6 + $0x140] ss:$16 sps:$4 sm:$0xff]   ;;  %v1417_v20 = vld [vmem:[#allocation6 + $0x6c] ss:$16 sps:$4 sm:$0xff]  }
  0x3c   :  { %v1363_v41 = vld [vmem:[#allocation6 + $0x344] ss:$16 sps:$4 sm:$0xff]   ;;  %v1366_v43 = vld [vmem:[#allocation6 + $0x340] ss:$16 sps:$4 sm:$0xff]   ;;  %v1420_v21 = vld [vmem:[#allocation6 + $0x26c] ss:$16 sps:$4 sm:$0xff]  }
  0x3d   :  { %853 = vmatpush1.bf16.msra.mxu0 %v1335_v22  ;;  %v1367_v44 = vld [vmem:[#allocation6 + $0x164] ss:$16 sps:$4 sm:$0xff]   ;;  %v1371_v47 = vld [vmem:[#allocation6 + $0x160] ss:$16 sps:$4 sm:$0xff]   ;;  %v1415_v22 = vld [vmem:[#allocation6 + $0x68] ss:$16 sps:$4 sm:$0xff]  }
  0x3e   :  { %894 = vmatpush1.bf16.msra.mxu1 %v1336_v23  ;;  %854 = vmatprep.subr.bf16.mxu0 %v1337_v24  ;;  %v1369_v45 = vld [vmem:[#allocation6 + $0x364] ss:$16 sps:$4 sm:$0xff]   ;;  %v1372_v48 = vld [vmem:[#allocation6 + $0x360] ss:$16 sps:$4 sm:$0xff]   ;;  %v1418_v23 = vld [vmem:[#allocation6 + $0x268] ss:$16 sps:$4 sm:$0xff]  }
  0x3f   :  { %895 = vmatprep.subr.bf16.mxu1 %v1339_v25  ;;  %v1373_v51 = vld [vmem:[#allocation6 + $0x184] ss:$16 sps:$4 sm:$0xff]   ;;  %v1377_v54 = vld [vmem:[#allocation6 + $0x180] ss:$16 sps:$4 sm:$0xff]   ;;  %v1423_v24 = vld [vmem:[#allocation6 + $0x8c] ss:$16 sps:$4 sm:$0xff]  }
  0x40   :  { %v1375_v53 = vld [vmem:[#allocation6 + $0x384] ss:$16 sps:$4 sm:$0xff]   ;;  %v1378_v55 = vld [vmem:[#allocation6 + $0x380] ss:$16 sps:$4 sm:$0xff]   ;;  %v1426_v25 = vld [vmem:[#allocation6 + $0x28c] ss:$16 sps:$4 sm:$0xff]  }
  0x41   :  { %855 = vmatpush1.bf16.msra.mxu0 %v1341_v26  ;;  %v1379_v56 = vld [vmem:[#allocation6 + $0x1a4] ss:$16 sps:$4 sm:$0xff]   ;;  %v1383_v58 = vld [vmem:[#allocation6 + $0x1a0] ss:$16 sps:$4 sm:$0xff]   ;;  %v1421_v26 = vld [vmem:[#allocation6 + $0x88] ss:$16 sps:$4 sm:$0xff]  }
  0x42   :  { %896 = vmatpush1.bf16.msra.mxu1 %v1342_v27  ;;  %856 = vmatprep.subr.bf16.mxu0 %v1343_v28  ;;  %v1381_v57 = vld [vmem:[#allocation6 + $0x3a4] ss:$16 sps:$4 sm:$0xff]   ;;  %v1384_v59 = vld [vmem:[#allocation6 + $0x3a0] ss:$16 sps:$4 sm:$0xff]   ;;  %v1424_v27 = vld [vmem:[#allocation6 + $0x288] ss:$16 sps:$4 sm:$0xff]  }
  0x43   :  { %897 = vmatprep.subr.bf16.mxu1 %v1345_v29  ;;  %v1385_v60 = vld [vmem:[#allocation6 + $0x1c4] ss:$16 sps:$4 sm:$0xff]   ;;  %v1389_v62 = vld [vmem:[#allocation6 + $0x1c0] ss:$16 sps:$4 sm:$0xff]   ;;  %v1429_v28 = vld [vmem:[#allocation6 + $0xac] ss:$16 sps:$4 sm:$0xff]  }
  0x44   :  { %v1387_v61 = vld [vmem:[#allocation6 + $0x3c4] ss:$16 sps:$4 sm:$0xff]   ;;  %v1390_v63 = vld [vmem:[#allocation6 + $0x3c0] ss:$16 sps:$4 sm:$0xff]   ;;  %v1432_v29 = vld [vmem:[#allocation6 + $0x2ac] ss:$16 sps:$4 sm:$0xff]  }
  0x45   :  { %857 = vmatpush1.bf16.msra.mxu0 %v1347_v30  ;;  %v1391_v0 = vld [vmem:[#allocation6 + $0x1e4] ss:$16 sps:$4 sm:$0xff]   ;;  %v1395_v2 = vld [vmem:[#allocation6 + $0x1e0] ss:$16 sps:$4 sm:$0xff]   ;;  %v1427_v30 = vld [vmem:[#allocation6 + $0xa8] ss:$16 sps:$4 sm:$0xff]  }
  0x46   :  { %898 = vmatpush1.bf16.msra.mxu1 %v1348_v31  ;;  %858 = vmatprep.subr.bf16.mxu0 %v1349_v32  ;;  %v1393_v1 = vld [vmem:[#allocation6 + $0x3e4] ss:$16 sps:$4 sm:$0xff]   ;;  %v1396_v3 = vld [vmem:[#allocation6 + $0x3e0] ss:$16 sps:$4 sm:$0xff]   ;;  %v1430_v31 = vld [vmem:[#allocation6 + $0x2a8] ss:$16 sps:$4 sm:$0xff]  }
  0x47   :  { %899 = vmatprep.subr.bf16.mxu1 %v1351_v33  ;;  %v1665_v4 = vld [vmem:[#allocation3] sm:$0xff]  ;;  %v1667_v5 = vld [vmem:[#allocation3 + $0x10] sm:$0xff]  ;;  %v1435_v32 = vld [vmem:[#allocation6 + $0xcc] ss:$16 sps:$4 sm:$0xff]   ;;  %s1140_s20 = sshll.u32 %s1597_s19, 4  ;;  %s1537_s21 = scalar_lea.vmem %s1151_s18, 512  ;;  %s1141_s20 = int_to_ptr.vmem [resolvable:$true] %s1140_s20 }
  0x48   :  { %v1671_v8 = vpack.c.bf16 %v1665_v4, %v1665_v4  ;;  %v1675_v9 = vpack.c.bf16 %v1667_v5, %v1667_v5  ;;  %v1438_v33 = vld [vmem:[#allocation6 + $0x2cc] ss:$16 sps:$4 sm:$0xff]   ;;  %p1538_p2 = scmp.ne.s32.totalorder %s1151_s18, %s1537_s21  ;;  %p1543_p4 = scmp.lt.s32.totalorder %s1537_s21, %s1537_s21 }
  0x49   :  { %859 = vmatpush1.bf16.msra.mxu0 %v1353_v34  ;;  %v1433_v34 = vld [vmem:[#allocation6 + $0xc8] ss:$16 sps:$4 sm:$0xff]  }
  0x4a   :  { %900 = vmatpush1.bf16.msra.mxu1 %v1354_v35  ;;  %860 = vmatprep.subr.bf16.mxu0 %v1355_v36  ;;  %v1436_v35 = vld [vmem:[#allocation6 + $0x2c8] ss:$16 sps:$4 sm:$0xff]   ;;  %v1441_v36 = vld [vmem:[#allocation6 + $0xec] ss:$16 sps:$4 sm:$0xff]   ;;  %p1544_p5 = por %p1543_p4, %p1542_p3 }
  0x4b   :  { %901 = vmatprep.subr.bf16.mxu1 %v1357_v37  ;;  %v1444_v37 = vld [vmem:[#allocation6 + $0x2ec] ss:$16 sps:$4 sm:$0xff]  }
  0x4c   :  { %p1545_p6 = pnand %p1544_p5, %p1538_p2 }
  0x4d   :  { %861 = vmatpush1.bf16.msra.mxu0 %v1359_v38  ;;  %v1439_v38 = vld [vmem:[#allocation6 + $0xe8] ss:$16 sps:$4 sm:$0xff]  }
  0x4e   :  { %902 = vmatpush1.bf16.msra.mxu1 %v1360_v39  ;;  %862 = vmatprep.subr.bf16.mxu0 %v1361_v40  ;;  %v1442_v39 = vld [vmem:[#allocation6 + $0x2e8] ss:$16 sps:$4 sm:$0xff]   ;;  %v1447_v40 = vld [vmem:[#allocation6 + $0x10c] ss:$16 sps:$4 sm:$0xff]  }
  0x4f   :  { %903 = vmatprep.subr.bf16.mxu1 %v1363_v41  ;;  %v1450_v41 = vld [vmem:[#allocation6 + $0x30c] ss:$16 sps:$4 sm:$0xff]  }
  0x51   :  { %863 = vmatpush1.bf16.msra.mxu0 %v1365_v42  ;;  %v1445_v42 = vld [vmem:[#allocation6 + $0x108] ss:$16 sps:$4 sm:$0xff]  }
  0x52   :  { %904 = vmatpush1.bf16.msra.mxu1 %v1366_v43  ;;  %864 = vmatprep.subr.bf16.mxu0 %v1367_v44  ;;  %v1448_v43 = vld [vmem:[#allocation6 + $0x308] ss:$16 sps:$4 sm:$0xff]   ;;  %v1453_v44 = vld [vmem:[#allocation6 + $0x12c] ss:$16 sps:$4 sm:$0xff]  }
  0x53   :  { %905 = vmatprep.subr.bf16.mxu1 %v1369_v45  ;;  %v1456_v45 = vld [vmem:[#allocation6 + $0x32c] ss:$16 sps:$4 sm:$0xff]  }
  0x55   :  { %865 = vmatpush1.bf16.msra.mxu0 %v1371_v47  ;;  %v1451_v47 = vld [vmem:[#allocation6 + $0x128] ss:$16 sps:$4 sm:$0xff]  }
  0x56   :  { %906 = vmatpush1.bf16.msra.mxu1 %v1372_v48  ;;  %866 = vmatprep.subr.bf16.mxu0 %v1373_v51  ;;  %v1454_v48 = vld [vmem:[#allocation6 + $0x328] ss:$16 sps:$4 sm:$0xff]   ;;  %v1462_v51 = vld [vmem:[#allocation6 + $0x34c] ss:$16 sps:$4 sm:$0xff]  }
  0x57   :  { %907 = vmatprep.subr.bf16.mxu1 %v1375_v53  ;;  %v1460_v53 = vld [vmem:[#allocation6 + $0x348] ss:$16 sps:$4 sm:$0xff]  }
  0x59   :  { %867 = vmatpush1.bf16.msra.mxu0 %v1377_v54  ;;  %v1465_v54 = vld [vmem:[#allocation6 + $0x16c] ss:$16 sps:$4 sm:$0xff]  }
  0x5a   :  { %908 = vmatpush1.bf16.msra.mxu1 %v1378_v55  ;;  %868 = vmatprep.subr.bf16.mxu0 %v1379_v56  ;;  %v1468_v55 = vld [vmem:[#allocation6 + $0x36c] ss:$16 sps:$4 sm:$0xff]   ;;  %v1463_v56 = vld [vmem:[#allocation6 + $0x168] ss:$16 sps:$4 sm:$0xff]  }
  0x5b   :  { %909 = vmatprep.subr.bf16.mxu1 %v1381_v57  ;;  %v1466_v57 = vld [vmem:[#allocation6 + $0x368] ss:$16 sps:$4 sm:$0xff]  }
  0x5d   :  { %869 = vmatpush1.bf16.msra.mxu0 %v1383_v58  ;;  %v1471_v58 = vld [vmem:[#allocation6 + $0x18c] ss:$16 sps:$4 sm:$0xff]  }
  0x5e   :  { %910 = vmatpush1.bf16.msra.mxu1 %v1384_v59  ;;  %870 = vmatprep.subr.bf16.mxu0 %v1385_v60  ;;  %v1474_v59 = vld [vmem:[#allocation6 + $0x38c] ss:$16 sps:$4 sm:$0xff]   ;;  %v1469_v60 = vld [vmem:[#allocation6 + $0x188] ss:$16 sps:$4 sm:$0xff]  }
  0x5f   :  { %911 = vmatprep.subr.bf16.mxu1 %v1387_v61  ;;  %v1472_v61 = vld [vmem:[#allocation6 + $0x388] ss:$16 sps:$4 sm:$0xff]  }
  0x61   :  { %871 = vmatpush1.bf16.msra.mxu0 %v1389_v62  ;;  %v1477_v62 = vld [vmem:[#allocation6 + $0x1ac] ss:$16 sps:$4 sm:$0xff]  }
  0x62   :  { %912 = vmatpush1.bf16.msra.mxu1 %v1390_v63  ;;  %872 = vmatprep.subr.bf16.mxu0 %v1391_v0  ;;  %v1480_v63 = vld [vmem:[#allocation6 + $0x3ac] ss:$16 sps:$4 sm:$0xff]   ;;  %v1475_v0 = vld [vmem:[#allocation6 + $0x1a8] ss:$16 sps:$4 sm:$0xff]  }
  0x63   :  { %913 = vmatprep.subr.bf16.mxu1 %v1393_v1  ;;  %v1478_v1 = vld [vmem:[#allocation6 + $0x3a8] ss:$16 sps:$4 sm:$0xff]  }
  0x65   :  { %873 = vmatpush1.bf16.msra.mxu0 %v1395_v2  ;;  %v1483_v2 = vld [vmem:[#allocation6 + $0x1cc] ss:$16 sps:$4 sm:$0xff]  }
  0x66   :  { %914 = vmatpush1.bf16.msra.mxu1 %v1396_v3  ;;  %924 = vmatprep.subr.bf16.mxu0 %v1399_v6  ;;  %v1486_v3 = vld [vmem:[#allocation6 + $0x3cc] ss:$16 sps:$4 sm:$0xff]   ;;  %v1481_v6 = vld [vmem:[#allocation6 + $0x1c8] ss:$16 sps:$4 sm:$0xff]  }
  0x67   :  { %965 = vmatprep.subr.bf16.mxu1 %v1402_v7  ;;  %v1484_v7 = vld [vmem:[#allocation6 + $0x3c8] ss:$16 sps:$4 sm:$0xff]  }
  0x68   :  { %875 = vmatmul.mubr.bf16.vlgmr.msra.gmra.mrb[0].mxu0 %v1671_v8 }
  0x69   :  { %916 = vmatmul.mubr.bf16.vlgmr.msra.gmra.mrb[0].mxu1 %v1675_v9  ;;  %925 = vmatpush1.bf16.msra.mxu0 %v1397_v10  ;;  %v1489_v10 = vld [vmem:[#allocation6 + $0x1ec] ss:$16 sps:$4 sm:$0xff]  }
  0x6a   :  { %966 = vmatpush1.bf16.msra.mxu1 %v1400_v11  ;;  %926 = vmatprep.subr.bf16.mxu0 %v1405_v12  ;;  %v1492_v11 = vld [vmem:[#allocation6 + $0x3ec] ss:$16 sps:$4 sm:$0xff]   ;;  %v1487_v12 = vld [vmem:[#allocation6 + $0x1e8] ss:$16 sps:$4 sm:$0xff]  }
  0x6b   :  { %967 = vmatprep.subr.bf16.mxu1 %v1408_v13  ;;  %956 = vmatprep.mubr.bf16.mxu0 %v1658_v49  ;;  %v1459_v49 = vld [vmem:[#allocation6 + $0x14c] ss:$16 sps:$4 sm:$0xff]   ;;  %v1490_v13 = vld [vmem:[#allocation6 + $0x3e8] ss:$16 sps:$4 sm:$0xff]  }
  0x6c   :  { %997 = vmatprep.mubr.bf16.mxu1 %v51_v52  ;;  %v1457_v52 = vld [vmem:[#allocation6 + $0x148] ss:$16 sps:$4 sm:$0xff]  }
  0x6d   :  { %927 = vmatpush1.bf16.msra.mxu0 %v1403_v14  ;;  %v182_v14 = vlaneseq }
  0x6e   :  { %968 = vmatpush1.bf16.msra.mxu1 %v1406_v15  ;;  %928 = vmatprep.subr.bf16.mxu0 %v1411_v16 }
  0x6f   :  { %969 = vmatprep.subr.bf16.mxu1 %v1414_v17  ;;  %v183_v15 = vshrl.u32 %v182_v14, 7  ;;  %v180_v17 = vld [vmem:[%s1766_s2] sm:$0xf]  ;;  %s1593_s2 = smov 64  }
  0x71   :  { %929 = vmatpush1.bf16.msra.mxu0 %v1409_v18  ;;  %v184_v16 = vsub.s32 0, %v183_v15  ;;  %v188_v18 = vsub.s32 1, %v183_v15 }
  0x72   :  { %970 = vmatpush1.bf16.msra.mxu1 %v1412_v19  ;;  %930 = vmatprep.subr.bf16.mxu0 %v1417_v20 }
  0x73   :  { %971 = vmatprep.subr.bf16.mxu1 %v1420_v21  ;;  %v185_v19 = vrot.slane %v180_v17, %v184_v16  ;;  %v189_v20 = vrot.slane %v180_v17, %v188_v18 }
  0x75   :  { %931 = vmatpush1.bf16.msra.mxu0 %v1415_v22 }
  0x76   :  { %972 = vmatpush1.bf16.msra.mxu1 %v1418_v23  ;;  %932 = vmatprep.subr.bf16.mxu0 %v1423_v24 }
  0x77   :  { %973 = vmatprep.subr.bf16.mxu1 %v1426_v25 }
  0x79   :  { %933 = vmatpush1.bf16.msra.mxu0 %v1421_v26 }
  0x7a   :  { %974 = vmatpush1.bf16.msra.mxu1 %v1424_v27  ;;  %934 = vmatprep.subr.bf16.mxu0 %v1429_v28 }
  0x7b   :  { %975 = vmatprep.subr.bf16.mxu1 %v1432_v29 }
  0x7d   :  { %935 = vmatpush1.bf16.msra.mxu0 %v1427_v30 }
  0x7e   :  { %976 = vmatpush1.bf16.msra.mxu1 %v1430_v31  ;;  %936 = vmatprep.subr.bf16.mxu0 %v1435_v32 }
  0x7f   :  { %977 = vmatprep.subr.bf16.mxu1 %v1438_v33  ;;  %v192_v33 = vsub.s32 2, %v183_v15 }
  0x81   :  { %937 = vmatpush1.bf16.msra.mxu0 %v1433_v34  ;;  %v196_v34 = vsub.s32 3, %v183_v15 }
  0x82   :  { %978 = vmatpush1.bf16.msra.mxu1 %v1436_v35  ;;  %938 = vmatprep.subr.bf16.mxu0 %v1441_v36  ;;  %v193_v35 = vrot.slane %v180_v17, %v192_v33 }
  0x83   :  { %979 = vmatprep.subr.bf16.mxu1 %v1444_v37  ;;  %v197_v36 = vrot.slane %v180_v17, %v196_v34 }
  0x85   :  { %939 = vmatpush1.bf16.msra.mxu0 %v1439_v38 }
  0x86   :  { %980 = vmatpush1.bf16.msra.mxu1 %v1442_v39  ;;  %940 = vmatprep.subr.bf16.mxu0 %v1447_v40 }
  0x87   :  { %981 = vmatprep.subr.bf16.mxu1 %v1450_v41 }
  0x89   :  { %941 = vmatpush1.bf16.msra.mxu0 %v1445_v42 }
  0x8a   :  { %982 = vmatpush1.bf16.msra.mxu1 %v1448_v43  ;;  %942 = vmatprep.subr.bf16.mxu0 %v1453_v44 }
  0x8b   :  { %983 = vmatprep.subr.bf16.mxu1 %v1456_v45 }
  0x8d   :  { %943 = vmatpush1.bf16.msra.mxu0 %v1451_v47 }
  0x8e   :  { %984 = vmatpush1.bf16.msra.mxu1 %v1454_v48  ;;  %944 = vmatprep.subr.bf16.mxu0 %v1459_v49 }
  0x8f   :  { %985 = vmatprep.subr.bf16.mxu1 %v1462_v51 }
  0x91   :  { %945 = vmatpush1.bf16.msra.mxu0 %v1457_v52 }
  0x92   :  { %986 = vmatpush1.bf16.msra.mxu1 %v1460_v53  ;;  %946 = vmatprep.subr.bf16.mxu0 %v1465_v54 }
  0x93   :  { %987 = vmatprep.subr.bf16.mxu1 %v1468_v55 }
  0x95   :  { %947 = vmatpush1.bf16.msra.mxu0 %v1463_v56 }
  0x96   :  { %988 = vmatpush1.bf16.msra.mxu1 %v1466_v57  ;;  %948 = vmatprep.subr.bf16.mxu0 %v1471_v58 }
  0x97   :  { %989 = vmatprep.subr.bf16.mxu1 %v1474_v59 }
  0x99   :  { %949 = vmatpush1.bf16.msra.mxu0 %v1469_v60 }
  0x9a   :  { %990 = vmatpush1.bf16.msra.mxu1 %v1472_v61  ;;  %950 = vmatprep.subr.bf16.mxu0 %v1477_v62 }
  0x9b   :  { %991 = vmatprep.subr.bf16.mxu1 %v1480_v63 }
  0x9d   :  { %951 = vmatpush1.bf16.msra.mxu0 %v1475_v0 }
  0x9e   :  { %992 = vmatpush1.bf16.msra.mxu1 %v1478_v1  ;;  %952 = vmatprep.subr.bf16.mxu0 %v1483_v2 }
  0x9f   :  { %993 = vmatprep.subr.bf16.mxu1 %v1486_v3 }
  0xa1   :  { %953 = vmatpush1.bf16.msra.mxu0 %v1481_v6 }
  0xa2   :  { %994 = vmatpush1.bf16.msra.mxu1 %v1484_v7  ;;  %954 = vmatprep.subr.bf16.mxu0 %v1489_v10 }
  0xa3   :  { %995 = vmatprep.subr.bf16.mxu1 %v1492_v11 }
  0xa5   :  { %955 = vmatpush1.bf16.msra.mxu0 %v1487_v12 }
  0xa6   :  { %996 = vmatpush1.bf16.msra.mxu1 %v1490_v13 }
  0xa8   :  { %957 = vmatmul.mubr.bf16.vlgmr.msra.gmra.mrb[4].mxu0 %v1671_v8 }
  0xa9   :  { %998 = vmatmul.mubr.bf16.vlgmr.msra.gmra.mrb[4].mxu1 %v1675_v9 }
 0x13b   :  { %v876_v21 = vpop.f32.mrb[0].mxu0 }
 0x13c   :  { %v917_v22 = vpop.f32.mrb[0].mxu1  ;;  %v877_v23 = vadd.f32 %v876_v21, %v185_v19  ;;  %v878_v24 = vpop.f32.mrb[1].mxu0 }
 0x13d   :  { %v919_v25 = vpop.f32.mrb[1].mxu1  ;;  %v879_v26 = vadd.f32 %v878_v24, %v189_v20  ;;  %v880_v27 = vpop.f32.mrb[2].mxu0 }
 0x13e   :  { %v921_v8 = vpop.f32.mrb[2].mxu1  ;;  %v918_v28 = vadd.f32 %v917_v22, %v877_v23  ;;  %v881_v9 = vpop.f32.mrb[3].mxu0 }
 0x13f   :  { %v922_v29 = vpop.f32.mrb[3].mxu1  ;;  %v920_v30 = vadd.f32 %v919_v25, %v879_v26 }
 0x140   :  { %v1686_v31 = vadd.f32 %v918_v28, %v1665_v4 }
 0x141   :  { %v1689_v32 = vadd.f32 %v920_v30, %v1654_v46 }
 0x142   :  { %1014 = vrot.lane.b32.xlu0 %v1686_v31, %s1593_s2 }
 0x143   :  { %1016 = vrot.lane.b32.xlu1 %v1689_v32, %s1593_s2 }
 0x17b   :  { %v958_v37 = vpop.f32.mrb[4].mxu0 }
 0x17c   :  { %v999_v38 = vpop.f32.mrb[4].mxu1  ;;  %v959_v39 = vadd.f32 %v958_v37, %v193_v35  ;;  %v960_v40 = vpop.f32.mrb[5].mxu0 }
 0x17d   :  { %v1001_v41 = vpop.f32.mrb[5].mxu1  ;;  %v961_v42 = vadd.f32 %v960_v40, %v197_v36  ;;  %v962_v4 = vpop.f32.mrb[6].mxu0 }
 0x17e   :  { %v1003_v43 = vpop.f32.mrb[6].mxu1  ;;  %v1000_v44 = vadd.f32 %v999_v38, %v959_v39  ;;  %v963_v46 = vpop.f32.mrb[7].mxu0 }
 0x17f   :  { %v1004_v45 = vpop.f32.mrb[7].mxu1  ;;  %v1002_v47 = vadd.f32 %v1001_v41, %v961_v42 }
 0x180   :  { %v1694_v48 = vadd.f32 %v1000_v44, %v1667_v5 }
 0x181   :  { %v1697_v49 = vadd.f32 %v1002_v47, %v1660_v50 }
 0x182   :  { %1018 = vrot.lane.b32.xlu1 %v1694_v48, %s1593_s2 }
 0x183   :  { %1020 = vrot.lane.b32.xlu0 %v1697_v49, %s1593_s2 }
 0x186   :  { %1044 = vrot.lane.b32.xlu1 %v1686_v31, %s1594_s15 }
 0x187   :  { %1039 = vrot.lane.b32.xlu0 %v1697_v49, %s1595_s16 }
 0x1b4   :  { %v1015_v5 = vpop.permute.xlu0 %1014 }
 0x1b5   :  { %1032 = vst.msk [vmem:[#allocation2] sm:$0xff] %vm1031_vm0, %v1015_v5  ;;  %v1017_v51 = vpop.permute.xlu1 %1016 }
 0x1b6   :  { %1038 = vst.msk [vmem:[#allocation2] sm:$0xff] %vm1037_vm1, %v1686_v31  ;;  %v1023_v50 = vsel %vm1022_vm2, %v1015_v5, %v1017_v51 }
 0x1b7   :  { %1071 = vrot.lane.b32.xlu1 %v1023_v50, %s1595_s16  ;;  %v1056_v11 = vadd.f32 %v1023_v50, %v1689_v32 }
 0x1f4   :  { %v1019_v52 = vpop.permute.xlu1 %1018 }
 0x1f5   :  { %v1024_v53 = vsel %vm1022_vm2, %v1017_v51, %v1019_v52  ;;  %v1021_v54 = vpop.permute.xlu0 %1020 }
 0x1f6   :  { %v1708_v55 = vsel %vm1022_vm2, %v1019_v52, %v1021_v54  ;;  %1036 = vst.msk [vmem:[#allocation2 + $0x20] sm:$0xff] %vm1022_vm2, %v1021_v54  ;;  %v1057_v23 = vadd.f32 %v1024_v53, %v1694_v48 }
 0x1f7   :  { %v1058_v25 = vadd.f32 %v1708_v55, %v1697_v49 }
 0x1f8   :  { %v1045_v56 = vpop.permute.xlu1 %1044 }
 0x1f9   :  { %1048 = vst.msk [vmem:[#allocation2] sm:$0xff] %vm1047_vm3, %v1045_v56  ;;  %v1040_v57 = vpop.permute.xlu0 %1039 }
 0x1fa   :  { %1043 = vst.msk [vmem:[#allocation2 + $0x20] sm:$0xff] %vm1042_vm4, %v1040_v57 }
 0x1fb   :  { %1050 = vst.msk [vmem:[#allocation2 + $0x20] sm:$0xff] %vm1049_vm5, %v1697_v49 }
 0x200   :  { %v1059_v58 = vld [vmem:[#allocation2] sm:$0xff] }
 0x201   :  { %1069 = vrot.lane.b32.xlu0 %v1059_v58, %s1595_s16  ;;  %1092 = vrot.lane.b32.xlu1 %v1059_v58, %s1594_s15  ;;  %v1055_v0 = vadd.f32 %v1059_v58, %v1686_v31 }
 0x202   :  { %v1063_v59 = vld [vmem:[#allocation2 + $0x20] sm:$0xff] }
 0x205   :  { %1094 = vrot.lane.b32.xlu0 %v1023_v50, %s1594_s15  ;;  %1096 = vrot.lane.b32.xlu1 %v1024_v53, %s1594_s15 }
 0x209   :  { %1073 = vrot.lane.b32.xlu0 %v1024_v53, %s1595_s16  ;;  %1075 = vrot.lane.b32.xlu1 %v1708_v55, %s1595_s16 }
 0x20d   :  { %1100 = vrot.lane.b32.xlu1 %v1063_v59, %s1594_s15  ;;  %1077 = vrot.lane.b32.xlu0 %v1063_v59, %s1595_s16 }
 0x211   :  { %1098 = vrot.lane.b32.xlu0 %v1708_v55, %s1594_s15 }
 0x229   :  { %v1072_v60 = vpop.permute.xlu1 %1071 }
 0x273   :  { %v1093_v61 = vpop.permute.xlu1 %1092  ;;  %v1070_v62 = vpop.permute.xlu0 %1069 }
 0x274   :  { %v1080_v63 = vsel %vm1079_vm6, %v1070_v62, %v1072_v60 }
 0x275   :  { %v1088_v1 = vadd.f32 %v1080_v63, %v1055_v0 }
 0x277   :  { %v1097_v2 = vpop.permute.xlu1 %1096  ;;  %v1095_v3 = vpop.permute.xlu0 %1094 }
 0x278   :  { %v1102_v6 = vsel %vm1037_vm1, %v1093_v61, %v1095_v3  ;;  %v1103_v17 = vsel %vm1037_vm1, %v1095_v3, %v1097_v2 }
 0x279   :  { %v1110_v7 = vadd.f32 %v1102_v6, %v1088_v1 }
 0x27b   :  { %v1114_v10 = vadd.f32 %v1110_v7, %v1023_v50  ;;  %v1074_v12 = vpop.permute.xlu0 %1073  ;;  %v1076_v15 = vpop.permute.xlu1 %1075 }
 0x27c   :  { %v1081_v13 = vsel %vm1079_vm6, %v1072_v60, %v1074_v12  ;;  %v1082_v21 = vsel %vm1079_vm6, %v1074_v12, %v1076_v15 }
 0x27d   :  { %v1118_v14 = vmul.f32 0.2, %v1114_v10  ;;  %v1089_v16 = vadd.f32 %v1081_v13, %v1056_v11  ;;  %v1090_v26 = vadd.f32 %v1082_v21, %v1057_v23 }
 0x27f   :  { %v1122_v18 = vsub.f32 %v1686_v31, %v1118_v14  ;;  %1130 = vst [vmem:[#allocation9] sm:$0xff] %v1118_v14  ;;  %v1111_v19 = vadd.f32 %v1103_v17, %v1089_v16  ;;  %v1078_v20 = vpop.permute.xlu0 %1077  ;;  %v1101_v8 = vpop.permute.xlu1 %1100 }
 0x280   :  { %v1083_v22 = vsel %vm1079_vm6, %v1076_v15, %v1078_v20 }
 0x281   :  { %1126 = vst [vmem:[#allocation8] sm:$0xff] %v1122_v18  ;;  %v1115_v24 = vadd.f32 %v1111_v19, %v1024_v53  ;;  %v1091_v28 = vadd.f32 %v1083_v22, %v1058_v25 }
 0x283   :  { %v1119_v27 = vmul.f32 0.2, %v1115_v24  ;;  %v1099_v9 = vpop.permute.xlu0 %1098 }
 0x284   :  { %v1104_v29 = vsel %vm1037_vm1, %v1097_v2, %v1099_v9  ;;  %v1105_v30 = vsel %vm1037_vm1, %v1099_v9, %v1101_v8 }
 0x285   :  { %v1123_v31 = vsub.f32 %v1689_v32, %v1119_v27  ;;  %1131 = vst [vmem:[#allocation9 + $0x8] sm:$0xff] %v1119_v27  ;;  %v1112_v33 = vadd.f32 %v1104_v29, %v1090_v26  ;;  %v1113_v34 = vadd.f32 %v1105_v30, %v1091_v28 }
 0x287   :  { %1127 = vst [vmem:[#allocation8 + $0x8] sm:$0xff] %v1123_v31  ;;  %v1116_v35 = vadd.f32 %v1112_v33, %v1708_v55  ;;  %v1117_v36 = vadd.f32 %v1113_v34, %v1063_v59 }
 0x289   :  { %v1120_v37 = vmul.f32 0.2, %v1116_v35  ;;  %v1121_v38 = vmul.f32 0.2, %v1117_v36 }
 0x28b   :  { %v1124_v39 = vsub.f32 %v1694_v48, %v1120_v37  ;;  %v1125_v40 = vsub.f32 %v1697_v49, %v1121_v38  ;;  %1132 = vst [vmem:[#allocation9 + $0x10] sm:$0xff] %v1120_v37  ;;  %1133 = vst [vmem:[#allocation9 + $0x18] sm:$0xff] %v1121_v38 }
 0x28c   :  { %1548 = shalt.err (!%p1545_p6)
}
 0x28d   :  { %s1549_s24 = scalar_lea.hbm %s1768_s4, 512 }
 0x28e   :  { %p1550_p7 = scmp.ne.s32.totalorder %s1768_s4, %s1549_s24  ;;  %p1553_p8 = scmp.lt.u32.totalorder %s1549_s24, %s1768_s4 }
 0x290   :  { %p1555_p9 = pnand %p1553_p8, %p1550_p7 }
 0x292   :  { %1558 = shalt.err (!%p1555_p9)
}
 0x293   :  { %1153 = dma.vmem_to_hbm [thread:$0]  %s1151_s18, 512, %s1768_s4, [#allocation10]   ;;  %1128 = vst [vmem:[#allocation8 + $0x10] sm:$0xff] %v1124_v39  ;;  %1129 = vst [vmem:[#allocation8 + $0x18] sm:$0xff] %v1125_v40 }
 0x294   :  { %s1559_s5 = scalar_lea.vmem %s1141_s20, 512  ;;  %p1564_p11 = scmp.lt.s32.totalorder %s1141_s20, %s1141_s20 }
 0x295   :  { %p1560_p10 = scmp.ne.s32.totalorder %s1141_s20, %s1559_s5  ;;  %p1565_p12 = scmp.lt.s32.totalorder %s1559_s5, %s1559_s5 }
 0x297   :  { %p1566_p13 = por %p1565_p12, %p1564_p11 }
 0x299   :  { %p1567_p0 = pnand %p1566_p13, %p1560_p10 }
 0x29b   :  { %1570 = shalt.err (!%p1567_p0)
}
 0x29c   :  { %s1571_s8 = scalar_lea.hbm %s1767_s3, 512 }
 0x29d   :  { %p1572_p1 = scmp.ne.s32.totalorder %s1767_s3, %s1571_s8  ;;  %p1575_p2 = scmp.lt.u32.totalorder %s1571_s8, %s1767_s3 }
 0x29f   :  { %p1577_p3 = pnand %p1575_p2, %p1572_p1 }
 0x2a1   :  { %1580 = shalt.err (!%p1577_p3)
}
 0x2a2   :  { %1143 = dma.vmem_to_hbm [thread:$0]  %s1141_s20, 512, %s1767_s3, [#allocation5]  }
 0x2a3   :  { %1585 = dma.done.wait [#allocation5], 512  }
 0x2a4   :  { %1586 = vsyncadd [#allocation5], 4294966784 }
 0x2a5   :  { %1587 = dma.done.wait [#allocation10], 512  }
 0x2a6   :  { %1588 = vsyncadd [#allocation10], 4294966784 }
 0x2a7   :  { %1160 = vsyncpa [#allocation4], 1 }
 0x2a8   :  { %1161 = vsyncpa [#allocation7], 1 }
 0x2a9   :  { %1162 = vsyncpa [#allocation5], 1 }
 0x2aa   :  { %1163 = vsyncpa [#allocation10], 1 }

</bundles_post_ra>
